<compile_context>
chip_gen: v7x
topology: tpu7x:2x2x1
jax: 0.10.0
libtpu: 0.0.40
codegen_flags: <defaults>
</compile_context>

<pallas_src>
import jax
import jax.numpy as jnp
from jax import lax
from jax.experimental import pallas as pl
from jax.experimental.pallas import tpu as pltpu


_VMEM_HEADROOM = 4 * 1024 * 1024  # headroom for mosaic internal scratch / semaphores


def _vmem_capacity_bytes() -> int:
    """Physical VMEM per TensorCore; conservative 64 MiB (v7x) if the query fails."""
    try:
        cap = int(getattr(pltpu.get_tpu_info(), "vmem_capacity_bytes", 0))
        if cap > 0:
            return cap
    except Exception:
        pass
    return 64 * 1024 * 1024


def _pack32(x):
    """Bitcast a sub-32-bit (..., L) array to (..., L//r) uint32 (bit-exact, ~free).

    32-bit elements get full lane/sublane utilisation inside the kernel, which
    matters most on v7x where the strided-sublane load side of the permute is
    closest to co-bottlenecking with the HBM DMA.  No-op for >=32-bit dtypes or
    when L doesn't pack cleanly.
    """
    itemsize = jnp.dtype(x.dtype).itemsize
    if itemsize >= 4:
        return x, x.dtype, x.shape[-1]
    ratio = 4 // itemsize
    L = x.shape[-1]
    if L % ratio != 0:
        return x, x.dtype, L  # odd lane count: keep native dtype (still correct)
    y = lax.bitcast_convert_type(
        x.reshape(*x.shape[:-1], L // ratio, ratio), jnp.uint32)
    return y, x.dtype, L


def _unpack32(y, orig_dtype, orig_L):
    if y.dtype == orig_dtype:
        return y
    x = lax.bitcast_convert_type(y, orig_dtype)  # (..., L//r, r)
    return x.reshape(*y.shape[:-1], orig_L)


def _choose_strip_count(num_strips: int, strip_bytes: int, max_block_bytes: int) -> int:
    """Largest divisor S of num_strips with S*strip_bytes <= max_block_bytes,
    keeping grid length >= 2 whenever there are >= 2 strips (so the single
    'parallel' grid axis can still be split across both v7x TensorCores)."""
    best = 1
    for s in range(1, num_strips + 1):
        if num_strips % s:
            continue
        if s * strip_bytes > max_block_bytes:
            break
        if num_strips >= 2 and num_strips // s < 2:
            continue
        best = s
    return best


def _make_strip_permute_kernel(S: int, P: int):
    """Kernel transposing one (S, A, P, L) block into (S, P, A, L).

    Each (A, L) plane is one strided-sublane load + one dense, lane-wide store
    (dense side kept on the STORE: v5e has a single vst slot per bundle).  The
    short P loop is statically unrolled for LLO visibility; the strip loop is a
    real fori_loop (modest unroll) so vreg live ranges stay bounded per plane
    instead of spilling when a full S*P static unroll exceeds the 64-vreg file.
    """
    def one_strip(s, x_ref, o_ref):
        for p in range(P):
            o_ref[s, p, :, :] = x_ref[s, :, p, :]

    if S <= 2:
        def kernel(x_ref, o_ref):
            for s in range(S):
                one_strip(s, x_ref, o_ref)
    else:
        unroll = 4 if S % 4 == 0 else (2 if S % 2 == 0 else 1)

        def kernel(x_ref, o_ref):
            def body(s, carry):
                one_strip(s, x_ref, o_ref)
                return carry
            lax.fori_loop(0, S, body, 0, unroll=unroll)

    return kernel


def _permute_strips(view: jax.Array) -> jax.Array:
    """(NS, A, P, L) -> (NS, P, A, L) pure copy, Pallas-pipelined over coarse
    multi-strip blocks.  Falls back to XLA only for pathologically large strips."""
    NS, A, P, L = view.shape

    packed, orig_dtype, orig_L = _pack32(view)
    Lp = packed.shape[-1]
    itemsize = jnp.dtype(packed.dtype).itemsize
    strip_bytes = A * P * Lp * itemsize

    capacity = _vmem_capacity_bytes()
    vmem_budget = (capacity * 3) // 4          # never request full VMEM (v7x: ~48 MiB)
    max_block_bytes = min(
        (vmem_budget - _VMEM_HEADROOM) // 4,   # 2-deep pipeline on in + out blocks
        capacity // 8,                         # v7x: 8 MiB blocks, v5e/v6e: 16 MiB
        16 * 1024 * 1024,
    )

    if strip_bytes > max_block_bytes:
        # TODO(synk): a single row-strip (ws*W*C) exceeds the VMEM budget (huge
        # W*C); use plain XLA rather than risk a VMEM-overflow compile failure.
        return jnp.swapaxes(view, 1, 2)

    S = _choose_strip_count(NS, strip_bytes, max_block_bytes)
    block_bytes = S * strip_bytes

    total_bytes = view.size * jnp.dtype(view.dtype).itemsize
    compiler_params = pltpu.CompilerParams(
        dimension_semantics=("parallel",),     # pure data-parallel copy, no reduction
        vmem_limit_bytes=int(min(4 * block_bytes + _VMEM_HEADROOM, vmem_budget)),
    )
    cost = pl.CostEstimate(flops=0, transcendentals=0,
                           bytes_accessed=int(2 * total_bytes))

    out = pl.pallas_call(
        _make_strip_permute_kernel(S, P),
        out_shape=jax.ShapeDtypeStruct((NS, P, A, Lp), packed.dtype),
        grid_spec=pltpu.PrefetchScalarGridSpec(
            num_scalar_prefetch=0,
            grid=(NS // S,),
            # Only the leading dim is blocked: both HBM blocks are single
            # contiguous S*strip_bytes slabs (long DMA bursts), and the last
            # two block dims equal the full array extents, so the (8,128)
            # rule holds for ANY window size / channel count.
            in_specs=[pl.BlockSpec((S, A, P, Lp), lambda s: (s, 0, 0, 0))],
            out_specs=pl.BlockSpec((S, P, A, Lp), lambda s: (s, 0, 0, 0)),
        ),
        compiler_params=compiler_params,
        cost_estimate=cost,
    )(packed)

    return _unpack32(out, orig_dtype, orig_L)


def window_partition(x: jax.Array, window_size: int) -> jax.Array:
    """(B, H, W, C) -> (B * (H//ws) * (W//ws), ws, ws, C)."""
    B, H, W, C = x.shape
    ws = window_size
    assert H % ws == 0 and W % ws == 0, "H and W must be divisible by window_size"
    nh, nw = H // ws, W // ws
    # Free row-major view: strip (b*nh+i), row-in-window q, window j, (row*C + c).
    x_view = x.reshape(B * nh, ws, nw, ws * C)
    out = _permute_strips(x_view)                  # (B*nh, nw, ws, ws*C)
    return out.reshape(B * nh * nw, ws, ws, C)


def window_reverse(windows: jax.Array, window_size: int,
                   orig_h: int, orig_w: int) -> jax.Array:
    """(num_windows*B, ws, ws, C) -> (B, H, W, C)."""
    ws = window_size
    assert orig_h % ws == 0 and orig_w % ws == 0
    nh, nw = orig_h // ws, orig_w // ws
    Nw, _, _, C = windows.shape
    B = Nw // (nh * nw)
    w_view = windows.reshape(B * nh, nw, ws, ws * C)
    out = _permute_strips(w_view)                  # (B*nh, ws, nw, ws*C)
    return out.reshape(B, orig_h, orig_w, C)


class SwinWindowing:
    """JAX/Pallas mirror of the PyTorch SwinWindowing module (no parameters)."""

    def __init__(self, window_size: int):
        self.window_size = window_size
        self.H = None
        self.W = None

    def window_partition(self, x: jax.Array) -> jax.Array:
        b, h, w, c = x.shape
        self.H, self.W = h, w
        return window_partition(x, self.window_size)

    def window_reverse(self, windows: jax.Array,
                       orig_h=None, orig_w=None) -> jax.Array:
        orig_h = orig_h if orig_h is not None else self.H
        orig_w = orig_w if orig_w is not None else self.W
        if orig_h is None or orig_w is None:
            raise ValueError("window_reverse needs orig_h/orig_w "
                             "(or a prior window_partition call on this instance).")
        return window_reverse(windows, self.window_size, orig_h, orig_w)


# ---- pure-JAX references (same math as the torch view/permute/reshape) -----
def _ref_partition(x, ws):
    b, h, w, c = x.shape
    x = x.reshape(b, h // ws, ws, w // ws, ws, c)
    return jnp.transpose(x, (0, 1, 3, 2, 4, 5)).reshape(-1, ws, ws, c)


def _ref_reverse(windows, ws, h, w):
    nh, nw = h // ws, w // ws
    b = windows.shape[0] // (nh * nw)
    x = windows.reshape(b, nh, nw, ws, ws, -1)
    return jnp.transpose(x, (0, 1, 3, 2, 4, 5)).reshape(b, h, w, -1)


if __name__ == "__main__":
    # (B, H, W, C, window_size, dtype) — small deterministic configs covering:
    # the original smoke test, canonical Swin ws=7 (non-multiple lanes),
    # the packed sub-32-bit path, and the coarse-block fori_loop path (S > 2).
    configs = [
        (2, 16, 16, 4, 8, jnp.float32),
        (2, 14, 14, 4, 7, jnp.float32),
        (1, 16, 16, 8, 4, jnp.bfloat16),
        (1, 64, 64, 4, 8, jnp.float32),
    ]

    key = jax.random.PRNGKey(0)
    for (B, H, W, C, ws, dt) in configs:
        key, sub = jax.random.split(key)
        x = jax.random.normal(sub, (B, H, W, C), dtype=jnp.float32).astype(dt)

        mod = SwinWindowing(ws)

        win = jax.block_until_ready(mod.window_partition(x))
        assert win.shape == (B * (H // ws) * (W // ws), ws, ws, C), win.shape
        assert jnp.array_equal(win, _ref_partition(x, ws)), \
            f"partition mismatch for config {(B, H, W, C, ws, dt)}"

        back = jax.block_until_ready(mod.window_reverse(win))
        assert back.shape == (B, H, W, C), back.shape
        assert jnp.array_equal(back, _ref_reverse(win, ws, H, W)), \
            f"reverse mismatch for config {(B, H, W, C, ws, dt)}"
        assert jnp.array_equal(back, x), \
            f"round-trip mismatch for config {(B, H, W, C, ws, dt)}"

    print("KERNEL_OK")
</pallas_src>

<mosaic_0001>
module attributes {stable_mosaic.version = 11 : i64} {
  func.func @kernel(%arg0: i32, %arg1: memref<2x8x2x32xf32, #tpu.memory_space<vmem>>, %arg2: memref<2x2x8x32xf32, #tpu.memory_space<vmem>>) attributes {dimension_semantics = [#tpu.dimension_semantics<parallel>], iteration_bounds = array<i64: 2>, scalar_prefetch = 0 : i64, scratch_operands = 0 : i64, tpu.core_type = #tpu.core_type<tc>, window_params = [{transform_indices = @transform_0, window_bounds = array<i64: 2, 8, 2, 32>}, {transform_indices = @transform_1, window_bounds = array<i64: 2, 2, 8, 32>}]} {
    %c0 = arith.constant 0 : index
    %c0_0 = arith.constant 0 : index
    %c0_1 = arith.constant 0 : index
    %c0_2 = arith.constant 0 : index
    %0 = vector.load %arg1[%c0, %c0_0, %c0_1, %c0_2] : memref<2x8x2x32xf32, #tpu.memory_space<vmem>>, vector<1x8x1x32xf32>
    %1 = vector.shape_cast %0 : vector<1x8x1x32xf32> to vector<8x32xf32>
    %c0_3 = arith.constant 0 : index
    %c0_4 = arith.constant 0 : index
    %c0_5 = arith.constant 0 : index
    %c0_6 = arith.constant 0 : index
    %2 = vector.load %arg2[%c0_3, %c0_4, %c0_5, %c0_6] : memref<2x2x8x32xf32, #tpu.memory_space<vmem>>, vector<1x1x8x32xf32>
    %3 = vector.shape_cast %2 : vector<1x1x8x32xf32> to vector<8x32xf32>
    %4 = vector.shape_cast %1 : vector<8x32xf32> to vector<1x1x8x32xf32>
    tpu.vector_store %arg2[%c0_3, %c0_4, %c0_5, %c0_6], %4 {strides = array<i32>} : memref<2x2x8x32xf32, #tpu.memory_space<vmem>>, vector<1x1x8x32xf32>,
    %c0_7 = arith.constant 0 : index
    %c0_8 = arith.constant 0 : index
    %c1 = arith.constant 1 : index
    %c0_9 = arith.constant 0 : index
    %5 = vector.load %arg1[%c0_7, %c0_8, %c1, %c0_9] : memref<2x8x2x32xf32, #tpu.memory_space<vmem>>, vector<1x8x1x32xf32>
    %6 = vector.shape_cast %5 : vector<1x8x1x32xf32> to vector<8x32xf32>
    %c0_10 = arith.constant 0 : index
    %c1_11 = arith.constant 1 : index
    %c0_12 = arith.constant 0 : index
    %c0_13 = arith.constant 0 : index
    %7 = vector.load %arg2[%c0_10, %c1_11, %c0_12, %c0_13] : memref<2x2x8x32xf32, #tpu.memory_space<vmem>>, vector<1x1x8x32xf32>
    %8 = vector.shape_cast %7 : vector<1x1x8x32xf32> to vector<8x32xf32>
    %9 = vector.shape_cast %6 : vector<8x32xf32> to vector<1x1x8x32xf32>
    tpu.vector_store %arg2[%c0_10, %c1_11, %c0_12, %c0_13], %9 {strides = array<i32>} : memref<2x2x8x32xf32, #tpu.memory_space<vmem>>, vector<1x1x8x32xf32>,
    %c1_14 = arith.constant 1 : index
    %c0_15 = arith.constant 0 : index
    %c0_16 = arith.constant 0 : index
    %c0_17 = arith.constant 0 : index
    %10 = vector.load %arg1[%c1_14, %c0_15, %c0_16, %c0_17] : memref<2x8x2x32xf32, #tpu.memory_space<vmem>>, vector<1x8x1x32xf32>
    %11 = vector.shape_cast %10 : vector<1x8x1x32xf32> to vector<8x32xf32>
    %c1_18 = arith.constant 1 : index
    %c0_19 = arith.constant 0 : index
    %c0_20 = arith.constant 0 : index
    %c0_21 = arith.constant 0 : index
    %12 = vector.load %arg2[%c1_18, %c0_19, %c0_20, %c0_21] : memref<2x2x8x32xf32, #tpu.memory_space<vmem>>, vector<1x1x8x32xf32>
    %13 = vector.shape_cast %12 : vector<1x1x8x32xf32> to vector<8x32xf32>
    %14 = vector.shape_cast %11 : vector<8x32xf32> to vector<1x1x8x32xf32>
    tpu.vector_store %arg2[%c1_18, %c0_19, %c0_20, %c0_21], %14 {strides = array<i32>} : memref<2x2x8x32xf32, #tpu.memory_space<vmem>>, vector<1x1x8x32xf32>,
    %c1_22 = arith.constant 1 : index
    %c0_23 = arith.constant 0 : index
    %c1_24 = arith.constant 1 : index
    %c0_25 = arith.constant 0 : index
    %15 = vector.load %arg1[%c1_22, %c0_23, %c1_24, %c0_25] : memref<2x8x2x32xf32, #tpu.memory_space<vmem>>, vector<1x8x1x32xf32>
    %16 = vector.shape_cast %15 : vector<1x8x1x32xf32> to vector<8x32xf32>
    %c1_26 = arith.constant 1 : index
    %c1_27 = arith.constant 1 : index
    %c0_28 = arith.constant 0 : index
    %c0_29 = arith.constant 0 : index
    %17 = vector.load %arg2[%c1_26, %c1_27, %c0_28, %c0_29] : memref<2x2x8x32xf32, #tpu.memory_space<vmem>>, vector<1x1x8x32xf32>
    %18 = vector.shape_cast %17 : vector<1x1x8x32xf32> to vector<8x32xf32>
    %19 = vector.shape_cast %16 : vector<8x32xf32> to vector<1x1x8x32xf32>
    tpu.vector_store %arg2[%c1_26, %c1_27, %c0_28, %c0_29], %19 {strides = array<i32>} : memref<2x2x8x32xf32, #tpu.memory_space<vmem>>, vector<1x1x8x32xf32>,
    return
  }
  func.func @transform_0(%arg0: i32) -> (i32, i32, i32, i32) {
    %c0_i32 = arith.constant 0 : i32
    %c0_i32_0 = arith.constant 0 : i32
    %c0_i32_1 = arith.constant 0 : i32
    %c0_i32_2 = arith.constant 0 : i32
    return %arg0, %c0_i32, %c0_i32_0, %c0_i32_1 : i32, i32, i32, i32
  }
  func.func @transform_1(%arg0: i32) -> (i32, i32, i32, i32) {
    %c0_i32 = arith.constant 0 : i32
    %c0_i32_0 = arith.constant 0 : i32
    %c0_i32_1 = arith.constant 0 : i32
    %c0_i32_2 = arith.constant 0 : i32
    return %arg0, %c0_i32, %c0_i32_0, %c0_i32_1 : i32, i32, i32, i32
  }
}

</mosaic_0001>

<bundles_post_ra>
// kernel: tpu_custom_call.1
= control target key start
LH: loop header
LB: loop body
LE: loop exit
PB: predicated region body
PF: predicated region fallthrough
CT: control target
= control target key end

     0   :  { %6 = vsyncpa [#allocation3], 0  ;;  %s808_s0 = inlined_call_operand.hbm [shape: f32[4,8,2,32], index: 0, kind: input, shape index: {}]   ;;  %s809_s1 = inlined_call_operand.hbm [shape: f32[4,2,8,32], index: 1, kind: output, shape index: {}]  }
   0x1   :  { %8 = vsyncpa [#allocation3 + $0x1], 0 }
   0x2   :  { %9 = vsyncpa [#allocation4], 0 }
   0x3   :  { %11 = vsyncpa [#allocation4 + $0x1], 0  ;;  %s569_s6 = smov 0   ;;  %s571_s7 = smov 0  }
   0x4   :  { %s573_s8 = smov 0   ;;  %s575_s9 = smov 0  }
   0x5 LB: > { %s590_s10 = sadd.s32 4294967295, %s551_s9   ;;  %s366_s11 = sadd.s32 4294967294, %s551_s9   ;;  %s551_s9 = sphi %s575_s9, %s822_s9   ;;  %s547_s8 = sphi %s573_s8, %s821_s8   ;;  %s543_s7 = sphi %s571_s7, %s820_s7   ;;  %s539_s6 = sphi %s569_s6, %s819_s6  }
   0x6   : > { %s594_s12 = sadd.s32 1, %s551_s9   ;;  %s24_s13 = sadd.s32 1, %s547_s8 }
   0x7   : > { %s21_s14 = ssub.s32 %s551_s9, %s594_s12  ;;  %p31_p0 = scmp.ne.s32.totalorder %s547_s8, %s543_s7 }
   0x8   : > { %p22_p1 = scmp.eq.s32.totalorder %s21_s14, 0  ;;  %p32_p2 = scmp.eq.s32.totalorder %s551_s9, 0 }
   0x9   : > { %p37_p3 = scmp.ne.s32.totalorder %s543_s7, %s539_s6  ;;  %p38_p4 = scmp.eq.s32.totalorder %s590_s10, 0 }
   0xa   : > { %s606_s15 = scalar_select %p22_p1, %s547_s8, %s24_s13  }
   0xb   : > { %p608_p5 = por %p32_p2, %p31_p0  ;;  %p612_p6 = por %p38_p4, %p37_p3 }
   0xc   : > { %p61_p7 = scmp.eq.s32.totalorder %s590_s10, 1  ;;  %p67_p8 = scmp.eq.s32.totalorder %s366_s11, 1 }
   0xd   : > { %p417_p10 = scmp.lt.s32.totalorder %s551_s9, 2  ;;  %s87_s20 = sand.u32 1, %s547_s8  }
   0xe   : > { %p619_p11 = por %p61_p7, %p31_p0  ;;  %p623_p12 = por %p67_p8, %p37_p3 }
   0xf   : > { %s402_s21 = sshll.u32 %s551_s9, 9  ;;  %s369_s22 = sshll.u32 %s87_s20, 5 }
  0x10   : > { %s813_s18 = scalar_select %p619_p11, 1, 0 }
  0x11   : > { %s814_s19 = scalar_select %p623_p12, 1, 0 }
  0x12   : > { %s632_s25 = scalar_lea.hbm %s808_s0, %s402_s21  ;;  %s91_s26 = scalar_lea.vmem [#allocation2], %s369_s22 }
  0x13   : > { %s99_s27 = sshll.u32 %s91_s26, 4  ;;  %p636_p13 = pnand %p417_p10, %p608_p5  ;;  %s640_s27 = int_to_ptr.vmem [resolvable:$true] %s99_s27 }
  0x14   : > { %s642_s29 = scalar_lea.sflag [#allocation3], %s87_s20  ;;  %s455_s30 = scalar_lea.hbm %s632_s25, 512 }
  0x15   : > { %p456_p0 = scmp.ne.s32.totalorder %s632_s25, %s455_s30  ;;  %p457_p1 = pneg %p636_p13 }
  0x16   : > { %s460_s4 = scalar_lea.hbm %s808_s0, 1024  ;;  %p461_p4 = scmp.lt.u32.totalorder %s632_s25, %s808_s0 }
  0x17   : > { %p458_p2 = pnand %p457_p1, %p456_p0  ;;  %p462_p5 = scmp.lt.u32.totalorder %s460_s4, %s455_s30 }
  0x18   : > { %p464_p8 = scmp.lt.u32.totalorder %s455_s30, %s632_s25 }
  0x19   : > { %p459_p3 = pneg %p458_p2  ;;  %p463_p7 = por %p462_p5, %p461_p4 }
  0x1b   : > { %p465_p10 = por %p464_p8, %p463_p7 }
  0x1d   : > { %p466_p9 = pnand %p465_p10, %p459_p3 }
  0x1f   : > { %469 = shalt.err (!%p466_p9)
}
  0x20   : > { %s470_s13 = scalar_lea.vmem %s640_s27, 512  ;;  %s553_s14 = smov [#allocation2]  }
  0x21   : > { %p471_p0 = scmp.ne.s32.totalorder %s640_s27, %s470_s13  ;;  %s475_s16 = sshll.u32 %s553_s14, 4  ;;  %s476_s16 = int_to_ptr.vmem [resolvable:$false] %s475_s16 }
  0x22   : > { %s477_s20 = scalar_lea.vmem %s476_s16, 1024  ;;  %p478_p11 = scmp.lt.s32.totalorder %s640_s27, %s476_s16 }
  0x23   : > { %p473_p2 = pnand %p471_p0, %p457_p1  ;;  %p479_p4 = scmp.lt.s32.totalorder %s477_s20, %s470_s13 }
  0x25   : > { %p474_p12 = pneg %p473_p2  ;;  %p480_p5 = por %p479_p4, %p478_p11 }
  0x27   : > { %p481_p7 = pnand %p480_p5, %p474_p12 }
  0x29   : > { %484 = shalt.err (!%p481_p7)
}
  0x2a   : > { %s554_s21 = smov 32   ;;  %s555_s22 = smov 2  }
  0x2b   : > { %412 = dma.hbm_to_vmem [thread:$0]  (!%p636_p13), %s632_s25, 512, %s640_s27, %s642_s29, %s554_s21, %s554_s21, %s555_s22  }
  0x2c   : > { %p373_p9 = scmp.ge.s32.totalorder %s551_s9, 1  ;;  %p107_p1 = scmp.lt.s32.totalorder %s551_s9, 3 }
  0x2e   : > { %p108_p3 = pnand %p373_p9, %p107_p1 }
  0x2f   : > { %s673_s23 = sand.u32 (!%p108_p3), 1, %s543_s7  }
  0x30   : > { %111 = sbr.rel (%p108_p3) target bundleno = 96 (0x60), region = 24  ;;  %s374_s24 = sshll.u32 (!%p108_p3), %s673_s23, 5 }
  0x31   : > { %s114_s26 = scalar_lea.sflag (!%p108_p3), [#allocation3], %s673_s23  ;;  %s679_s30 = scalar_lea.vmem (!%p108_p3), [#allocation2], %s374_s24 }
  0x37   : > { %530 = dma.done.wait (%p612_p6), %s114_s26, 512  }
  0x38   : > { %532 = vsyncadd (%p612_p6), %s114_s26, 4294966784  ;;  %vm155_vm0 = vcmask 1041409   ;;  %vm158_vm1 = vcmask 1042434   ;;  %vm161_vm2 = vcmask 1043459   ;;  %vm164_vm3 = vcmask 1044484   ;;  %s721_s17 = scalar_lea.vmem [#allocation5], %s374_s24 }
  0x39   : > { %vm167_vm4 = vcmask 1045509   ;;  %vm170_vm5 = vcmask 1046534   ;;  %vm173_vm6 = vcmask 1047559   ;;  %v138_v0 = vld [vmem:[%s679_s30] sm:$0x1]  ;;  %vm176_vm7 = vcmask 261120  }
  0x3a   : > { %v139_v1 = vld [vmem:[%s679_s30 + $0x2] sm:$0x1]  ;;  %v140_v2 = vld [vmem:[%s679_s30 + $0x4] sm:$0x1]  ;;  %v141_v3 = vld [vmem:[%s679_s30 + $0x6] sm:$0x1] }
  0x3b   : > { %v142_v4 = vld [vmem:[%s679_s30 + $0x8] sm:$0x1]  ;;  %v143_v5 = vld [vmem:[%s679_s30 + $0xa] sm:$0x1]  ;;  %v144_v6 = vld [vmem:[%s679_s30 + $0xc] sm:$0x1] }
  0x3c   : > { %v145_v7 = vld [vmem:[%s679_s30 + $0xe] sm:$0x1]  ;;  %v154_v8 = vrot.slane %v139_v1, 7  ;;  %v157_v9 = vrot.slane %v140_v2, 6  ;;  %v160_v10 = vrot.slane %v141_v3, 5  ;;  %v163_v11 = vrot.slane %v142_v4, 4 }
  0x3d   : > { %v166_v12 = vrot.slane %v143_v5, 3  ;;  %v178_v13 = vld [vmem:[%s679_s30 + $0x1] sm:$0x1]  ;;  %v169_v15 = vrot.slane %v144_v6, 2  ;;  %v172_v16 = vrot.slane %v145_v7, 1  ;;  %s293_s25 = sshll.u32 %s721_s17, 4  ;;  %s754_s25 = int_to_ptr.vmem [resolvable:$true] %s293_s25 }
  0x3e   : > { %v156_v14 = vsel %vm155_vm0, %v154_v8, %v138_v0  ;;  %v179_v17 = vld [vmem:[%s679_s30 + $0x3] sm:$0x1]  ;;  %v180_v18 = vld [vmem:[%s679_s30 + $0x5] sm:$0x1]  ;;  %v181_v20 = vld [vmem:[%s679_s30 + $0x7] sm:$0x1] }
  0x3f   : > { %v159_v19 = vsel %vm158_vm1, %v157_v9, %v156_v14  ;;  %v182_v21 = vld [vmem:[%s679_s30 + $0x9] sm:$0x1]  ;;  %v183_v22 = vld [vmem:[%s679_s30 + $0xb] sm:$0x1]  ;;  %v184_v24 = vld [vmem:[%s679_s30 + $0xd] sm:$0x1] }
  0x40   : > { %v162_v23 = vsel %vm161_vm2, %v160_v10, %v159_v19  ;;  %v185_v25 = vld [vmem:[%s679_s30 + $0xf] sm:$0x1]  ;;  %v194_v26 = vrot.slane %v179_v17, 7  ;;  %v196_v27 = vrot.slane %v180_v18, 6  ;;  %v198_v29 = vrot.slane %v181_v20, 5  ;;  %s404_s27 = sshll.u32 %s590_s10, 9 }
  0x41   : > { %v165_v28 = vsel %vm164_vm3, %v163_v11, %v162_v23  ;;  %v200_v30 = vrot.slane %v182_v21, 4  ;;  %v202_v31 = vrot.slane %v183_v22, 3  ;;  %v377_v32 = vld [vmem:[%s679_s30 + $0x10] sm:$0x1]  ;;  %v204_v35 = vrot.slane %v184_v24, 2  ;;  %s760_s10 = scalar_lea.hbm %s809_s1, %s404_s27  ;;  %s279_s2 = scalar_lea.sflag [#allocation4], %s673_s23 }
  0x42   : > { %v168_v33 = vsel %vm167_vm4, %v166_v12, %v165_v28  ;;  %v195_v34 = vsel %vm155_vm0, %v194_v26, %v178_v13  ;;  %v206_v36 = vrot.slane %v185_v25, 1  ;;  %v378_v37 = vld [vmem:[%s679_s30 + $0x12] sm:$0x1]  ;;  %v379_v38 = vld [vmem:[%s679_s30 + $0x14] sm:$0x1]  ;;  %s485_s3 = scalar_lea.vmem %s754_s25, 512 }
  0x43   : > { %v171_v39 = vsel %vm170_vm5, %v169_v15, %v168_v33  ;;  %v197_v40 = vsel %vm158_vm1, %v196_v27, %v195_v34  ;;  %v380_v41 = vld [vmem:[%s679_s30 + $0x16] sm:$0x1]  ;;  %v381_v42 = vld [vmem:[%s679_s30 + $0x18] sm:$0x1]  ;;  %v382_v43 = vld [vmem:[%s679_s30 + $0x1a] sm:$0x1]  ;;  %p486_p6 = scmp.ne.s32.totalorder %s754_s25, %s485_s3 }
  0x44   : > { %v174_v44 = vsel %vm173_vm6, %v172_v16, %v171_v39  ;;  %v199_v45 = vsel %vm161_vm2, %v198_v29, %v197_v40  ;;  %v383_v46 = vld [vmem:[%s679_s30 + $0x1c] sm:$0x1]  ;;  %v384_v47 = vld [vmem:[%s679_s30 + $0x1e] sm:$0x1]  ;;  %v228_v48 = vrot.slane %v378_v37, 7  ;;  %v230_v49 = vrot.slane %v379_v38, 6 }
  0x45   : > { %177 = vst.msk [vmem:[%s721_s17] sm:$0xff] %vm176_vm7, %v174_v44  ;;  %v201_v50 = vsel %vm164_vm3, %v200_v30, %v199_v45  ;;  %v232_v51 = vrot.slane %v380_v41, 5  ;;  %v234_v52 = vrot.slane %v381_v42, 4  ;;  %v236_v53 = vrot.slane %v382_v43, 3  ;;  %v386_v54 = vld [vmem:[%s679_s30 + $0x11] sm:$0x1] }
  0x46   : > { %v203_v55 = vsel %vm167_vm4, %v202_v31, %v201_v50  ;;  %v229_v56 = vsel %vm155_vm0, %v228_v48, %v377_v32  ;;  %v238_v57 = vrot.slane %v383_v46, 2  ;;  %v240_v58 = vrot.slane %v384_v47, 1  ;;  %v387_v59 = vld [vmem:[%s679_s30 + $0x13] sm:$0x1]  ;;  %v388_v60 = vld [vmem:[%s679_s30 + $0x15] sm:$0x1] }
  0x47   : > { %v205_v61 = vsel %vm170_vm5, %v204_v35, %v203_v55  ;;  %v231_v62 = vsel %vm158_vm1, %v230_v49, %v229_v56  ;;  %v389_v63 = vld [vmem:[%s679_s30 + $0x17] sm:$0x1]  ;;  %v390_v0 = vld [vmem:[%s679_s30 + $0x19] sm:$0x1]  ;;  %v391_v1 = vld [vmem:[%s679_s30 + $0x1b] sm:$0x1] }
  0x48   : > { %v207_v2 = vsel %vm173_vm6, %v206_v36, %v205_v61  ;;  %v233_v3 = vsel %vm161_vm2, %v232_v51, %v231_v62  ;;  %v392_v4 = vld [vmem:[%s679_s30 + $0x1d] sm:$0x1]  ;;  %v261_v5 = vrot.slane %v387_v59, 7  ;;  %v263_v6 = vrot.slane %v388_v60, 6  ;;  %v393_v8 = vld [vmem:[%s679_s30 + $0x1f] sm:$0x1] }
  0x49   : > { %376 = vst.msk [vmem:[%s721_s17 + $0x8] sm:$0xff] %vm176_vm7, %v207_v2  ;;  %v235_v7 = vsel %vm164_vm3, %v234_v52, %v233_v3  ;;  %v265_v9 = vrot.slane %v389_v63, 5  ;;  %v267_v10 = vrot.slane %v390_v0, 4  ;;  %v269_v13 = vrot.slane %v391_v1, 3  ;;  %p816_p11 = scmp.ne.s32.totalorder %s813_s18, 0  ;;  %s556_s4 = smov [#allocation5]  }
  0x4a   : > { %v237_v11 = vsel %vm167_vm4, %v236_v53, %v235_v7  ;;  %v262_v12 = vsel %vm155_vm0, %v261_v5, %v386_v54  ;;  %v271_v16 = vrot.slane %v392_v4, 2  ;;  %v273_v19 = vrot.slane %v393_v8, 1  ;;  %s489_s5 = sshll.u32 %s556_s4, 4  ;;  %s490_s5 = int_to_ptr.vmem [resolvable:$false] %s489_s5 }
  0x4b   : > { %v239_v14 = vsel %vm170_vm5, %v238_v57, %v237_v11  ;;  %v264_v15 = vsel %vm158_vm1, %v263_v6, %v262_v12  ;;  %p487_p12 = pnand %p486_p6, %p816_p11  ;;  %s491_s11 = scalar_lea.vmem %s490_s5, 1024 }
  0x4c   : > { %v241_v17 = vsel %vm173_vm6, %v240_v58, %v239_v14  ;;  %v266_v18 = vsel %vm161_vm2, %v265_v9, %v264_v15  ;;  %p492_p8 = scmp.lt.s32.totalorder %s754_s25, %s490_s5  ;;  %p493_p10 = scmp.lt.s32.totalorder %s491_s11, %s485_s3 }
  0x4d   : > { %385 = vst.msk [vmem:[%s721_s17 + $0x10] sm:$0xff] %vm176_vm7, %v241_v17  ;;  %v268_v20 = vsel %vm164_vm3, %v267_v10, %v266_v18  ;;  %p488_p13 = pneg %p487_p12 }
  0x4e   : > { %v270_v21 = vsel %vm167_vm4, %v269_v13, %v268_v20  ;;  %p494_p0 = por %p493_p10, %p492_p8 }
  0x4f   : > { %v272_v22 = vsel %vm170_vm5, %v271_v16, %v270_v21 }
  0x50   : > { %v274_v23 = vsel %vm173_vm6, %v273_v19, %v272_v22  ;;  %p495_p2 = pnand %p494_p0, %p488_p13 }
  0x51   : > { %394 = vst.msk [vmem:[%s721_s17 + $0x18] sm:$0xff] %vm176_vm7, %v274_v23 }
  0x52   : > { %498 = shalt.err (!%p495_p2)
}
  0x53   : > { %s499_s13 = scalar_lea.hbm %s760_s10, 512  ;;  %s503_s20 = scalar_lea.hbm %s809_s1, 1024 }
  0x54   : > { %p500_p4 = scmp.ne.s32.totalorder %s760_s10, %s499_s13  ;;  %p504_p9 = scmp.lt.u32.totalorder %s760_s10, %s809_s1 }
  0x55   : > { %p505_p1 = scmp.lt.u32.totalorder %s503_s20, %s499_s13  ;;  %p507_p6 = scmp.lt.u32.totalorder %s499_s13, %s760_s10 }
  0x56   : > { %p501_p5 = pnand %p500_p4, %p816_p11 }
  0x57   : > { %p506_p3 = por %p505_p1, %p504_p9 }
  0x58   : > { %p502_p7 = pneg %p501_p5 }
  0x59   : > { %p508_p12 = por %p507_p6, %p506_p3 }
  0x5b   : > { %p509_p13 = pnand %p508_p12, %p502_p7 }
  0x5d   : > { %512 = shalt.err (!%p509_p13)
}
  0x5e   : > { %s557_s24 = smov 128   ;;  %s558_s26 = smov 8  }
  0x5f   : > { %407 = dma.vmem_to_hbm [thread:$0]  (%p816_p11), %s754_s25, 512, %s760_s10, %s279_s2, %s557_s24, %s557_s24, %s558_s26  }
  0x60 PF: > { %s308_s30 = sand.u32 1, %s539_s6   ;;  %p817_p8 = scmp.ne.s32.totalorder %s814_s19, 0 }
  0x61   : > { %p818_p10 = scmp.ge.s32.totalorder %s551_s9, 2  ;;  %s309_s17 = scalar_lea.sflag [#allocation4], %s308_s30 }
  0x63   : > { %p414_p0 = pnand %p818_p10, %p817_p8 }
  0x65   : > { %534 = dma.done.wait (!%p414_p0), %s309_s17, 512  }
  0x66   : > { %536 = vsyncadd (!%p414_p0), %s309_s17, 4294966784  ;;  %p14_p2 = scmp.ge.s32.totalorder %s594_s12, 4   ;;  %s819_s6 = smov %s543_s7 }
  0x67   : > { %s820_s7 = smov %s547_s8  ;;  %s821_s8 = smov %s606_s15 }
  0x68   : > { %s822_s9 = smov %s594_s12  ;;  %16 = sbr.rel (!%p14_p2) target bundleno = 5 (0x5), region = 73 }
  0x6f   :  { %314 = vsyncpa [#allocation3], 1 }
  0x70   :  { %316 = vsyncpa [#allocation3 + $0x1], 1 }
  0x71   :  { %317 = vsyncpa [#allocation4], 1 }
  0x72   :  { %319 = vsyncpa [#allocation4 + $0x1], 1 }

</bundles_post_ra>
